<compile_context>
chip_gen: v7x
topology: tpu7x:2x2x1
jax: 0.10.0
libtpu: 0.0.40
codegen_flags: <defaults>
</compile_context>

<pallas_src>
import jax
import jax.numpy as jnp
from jax.experimental import pallas as pl
from jax.experimental.pallas import tpu as pltpu

N_GRAPHS = 32          # graphs batched per pallas_call
N_NODES = 8            # nodes (molecules) per graph
SEQ_LEN = 16           # SMILES token sequence length
EMB_DIM = 64           # token embedding dim
IN_CHANNELS = 128      # paccmann latent size (module default 256, scaled down)
HIDDEN_CHANNELS = 256  # GCN hidden size (module default 512, scaled down)
VOCAB = 32             # toy SMILES vocabulary
M_ROWS = N_GRAPHS * N_NODES  # 256 total node rows


def _encoder_kernel(counts_ref, t_ref, rs_ref, bp_ref, out_ref):
    """Single grid step over all G*N node rows.

    counts_ref: [M, VOCAB]  bf16  pre-aggregated token counts  (A_hat @ counts)
    t_ref:      [VOCAB, H]  bf16  fused (embedding @ encoder @ GCN-weight / S)
    rs_ref:     [M, 1]      f32   per-node rowsum(A_hat)  (for the bias fold)
    bp_ref:     [3, H]      f32   row0 = b_enc@w_gcn, row1 = b_gcn, row2 = alpha
    out_ref:    [M, H]      f32
    """
    bp = bp_ref[...]
    b_f = bp[0:1, :]
    b_gcn = bp[1:2, :]
    alpha = bp[2:3, :]

    # ---- fused encode + GCN weight + (pre-applied) aggregation:
    #      h = (A_hat @ counts) @ T_fused  ;  bf16 operands, f32 accumulation.
    # TODO(synk): the real PaccMann GRU-VAE encoder (stacked GRU + attention,
    # pretrained weights) has no standalone Pallas equivalent; this affine
    # stand-in (token-count pooling + dense projection) replaces it, and the
    # algebraic fusion / A_hat pre-application are only valid while it is affine.
    h = jnp.dot(counts_ref[...], t_ref[...],
                preferred_element_type=jnp.float32)            # [M, H] f32

    # ---- folded GCN bias:  A_hat @ (1 b_f) + b_gcn = rowsum(A_hat) * b_f + b_gcn
    h = h + rs_ref[...] * b_f + b_gcn

    # ---- PReLU(hidden_channels): per-channel negative slope, f32 epilogue
    out_ref[...] = jnp.where(h >= 0.0, h, alpha * h)


def init_params(key):
    k1, k2, k3 = jax.random.split(key, 3)
    emb_table = jax.random.normal(k1, (VOCAB, EMB_DIM), jnp.float32) * 0.1
    w_enc = jax.random.normal(k2, (EMB_DIM, IN_CHANNELS), jnp.float32) \
        * (1.0 / jnp.sqrt(EMB_DIM))
    b_enc = jnp.zeros((1, IN_CHANNELS), jnp.float32)
    # glorot (as in torch_geometric GCNConv), bias init to zeros
    limit = float(jnp.sqrt(6.0 / (IN_CHANNELS + HIDDEN_CHANNELS)))
    w_gcn = jax.random.uniform(k3, (IN_CHANNELS, HIDDEN_CHANNELS), jnp.float32,
                               -limit, limit)
    b_gcn = jnp.zeros((1, HIDDEN_CHANNELS), jnp.float32)
    alpha = jnp.full((1, HIDDEN_CHANNELS), 0.25, jnp.float32)  # PReLU init

    # --- host-side algebraic fusion (done once) ---
    w_fused = w_enc @ w_gcn                              # [EMB, H]
    t_fused = (emb_table @ w_fused) / float(SEQ_LEN)     # [VOCAB, H]
    b_f = b_enc @ w_gcn                                  # [1, H]
    bias_pack = jnp.concatenate([b_f, b_gcn, alpha], axis=0)  # [3, H]
    return dict(t_fused=t_fused.astype(jnp.bfloat16), bias_pack=bias_pack)


def build_normalized_adjacency(edge_index, n):
    """Dense gcn_norm: scatter-add edges, add remaining self-loops,
    symmetric D^-1/2 (A + I) D^-1/2. Static graph -> call once and reuse."""
    src, dst = edge_index[0], edge_index[1]
    adj = jnp.zeros((n, n), jnp.float32).at[dst, src].add(1.0)
    diag = jnp.diagonal(adj)
    adj = adj + jnp.diag(jnp.where(diag == 0.0, 1.0, 0.0))   # add_remaining_self_loops
    deg = jnp.sum(adj, axis=1)
    dinv = jnp.where(deg > 0, 1.0 / jnp.sqrt(deg), 0.0)
    return dinv[:, None] * adj * dinv[None, :]


def tokens_to_counts(x_tokens):
    """[G, N, S] int token ids -> [G, N, VOCAB] float token-count matrix."""
    oh = jax.nn.one_hot(x_tokens, VOCAB, dtype=jnp.float32)  # [G, N, S, V]
    return oh.sum(axis=2)                                    # [G, N, V]


def preaggregate(counts, a_hat):
    """Static-topology GCN aggregation applied to the counts (A @ X fold).
    counts: [G, N, V], a_hat: [N, N] -> [G*N, V] (shared topology per graph)."""
    agg = jnp.einsum('ij,gjv->giv', a_hat, counts)
    return agg.reshape(-1, VOCAB)


def encoder_forward(counts_agg, rowsum, params):
    """counts_agg: [M, VOCAB] bf16; rowsum: [M, 1] f32."""
    m = counts_agg.shape[0]
    out = pl.pallas_call(
        _encoder_kernel,
        out_shape=jax.ShapeDtypeStruct((m, HIDDEN_CHANNELS), jnp.float32),
        grid=(1,),
        in_specs=[
            pl.BlockSpec((m, VOCAB), lambda i: (0, 0)),               # counts_agg
            pl.BlockSpec((VOCAB, HIDDEN_CHANNELS), lambda i: (0, 0)),  # T_fused
            pl.BlockSpec((m, 1), lambda i: (0, 0)),                   # rowsum(A_hat)
            pl.BlockSpec((3, HIDDEN_CHANNELS), lambda i: (0, 0)),     # biases+alpha
        ],
        out_specs=pl.BlockSpec((m, HIDDEN_CHANNELS), lambda i: (0, 0)),
        compiler_params=pltpu.CompilerParams(
            dimension_semantics=("arbitrary",)),
    )(counts_agg, params["t_fused"], rowsum, params["bias_pack"])
    return out


def reference_forward(counts_agg, rowsum, params):
    """Pure-JAX reference using the identical (bf16-cast) operands."""
    h = jnp.dot(counts_agg, params["t_fused"],
                preferred_element_type=jnp.float32)
    bp = params["bias_pack"]
    h = h + rowsum * bp[0:1, :] + bp[1:2, :]
    return jnp.where(h >= 0.0, h, bp[2:3, :] * h)


if __name__ == "__main__":
    key = jax.random.PRNGKey(0)
    kp, kx = jax.random.split(key)
    params = init_params(kp)

    # Batched node token sequences (SMILES-like int ids).
    x_tokens = jax.random.randint(kx, (N_GRAPHS, N_NODES, SEQ_LEN), 0, VOCAB,
                                  dtype=jnp.int32)

    # Ring graph, bidirectional edges (same static topology per graph).
    idx = jnp.arange(N_NODES, dtype=jnp.int32)
    src = jnp.concatenate([idx, (idx + 1) % N_NODES])
    dst = jnp.concatenate([(idx + 1) % N_NODES, idx])
    edge_index = jnp.stack([src, dst]).astype(jnp.int32)   # [2, 2*N]

    # Static graph: build normalized adjacency ONCE, outside the forward.
    a_hat = build_normalized_adjacency(edge_index, N_NODES)        # [N, N]
    rowsum = jnp.tile(a_hat.sum(axis=1), (N_GRAPHS,))[:, None]     # [G*N, 1]

    counts = tokens_to_counts(x_tokens)                            # [G, N, V]
    counts_agg = preaggregate(counts, a_hat).astype(jnp.bfloat16)  # [G*N, V] bf16

    out = encoder_forward(counts_agg, rowsum, params)
    jax.block_until_ready(out)

    assert out.shape == (N_GRAPHS * N_NODES, HIDDEN_CHANNELS)
    assert out.dtype == jnp.float32

    ref = reference_forward(counts_agg, rowsum, params)
    assert jnp.allclose(out, ref, rtol=5e-2, atol=1e-3)

    print("KERNEL_OK")
</pallas_src>

<mosaic_0001>
module attributes {stable_mosaic.version = 11 : i64} {
  func.func @_encoder_kernel(%arg0: i32, %arg1: memref<256x32xbf16, #tpu.memory_space<vmem>>, %arg2: memref<32x256xbf16, #tpu.memory_space<vmem>>, %arg3: memref<256x1xf32, #tpu.memory_space<vmem>>, %arg4: memref<3x256xf32, #tpu.memory_space<vmem>>, %arg5: memref<256x256xf32, #tpu.memory_space<vmem>>) attributes {dimension_semantics = [#tpu.dimension_semantics<arbitrary>], iteration_bounds = array<i64: 1>, scalar_prefetch = 0 : i64, scratch_operands = 0 : i64, tpu.core_type = #tpu.core_type<tc>, window_params = [{pipeline_mode = #tpu.pipeline_mode<synchronous>, transform_indices = @transform_0, window_bounds = array<i64: 256, 32>}, {pipeline_mode = #tpu.pipeline_mode<synchronous>, transform_indices = @transform_1, window_bounds = array<i64: 32, 256>}, {pipeline_mode = #tpu.pipeline_mode<synchronous>, transform_indices = @transform_2, window_bounds = array<i64: 256, 1>}, {pipeline_mode = #tpu.pipeline_mode<synchronous>, transform_indices = @transform_3, window_bounds = array<i64: 3, 256>}, {pipeline_mode = #tpu.pipeline_mode<synchronous>, transform_indices = @transform_4, window_bounds = array<i64: 256, 256>}]} {
    %c0 = arith.constant 0 : index
    %c0_0 = arith.constant 0 : index
    %0 = vector.load %arg4[%c0, %c0_0] : memref<3x256xf32, #tpu.memory_space<vmem>>, vector<3x256xf32>
    %1 = vector.extract_strided_slice %0 {offsets = [0, 0], sizes = [1, 256], strides = [1, 1]} : vector<3x256xf32> to vector<1x256xf32>
    %2 = vector.extract_strided_slice %0 {offsets = [1, 0], sizes = [1, 256], strides = [1, 1]} : vector<3x256xf32> to vector<1x256xf32>
    %3 = vector.extract_strided_slice %0 {offsets = [2, 0], sizes = [1, 256], strides = [1, 1]} : vector<3x256xf32> to vector<1x256xf32>
    %c0_1 = arith.constant 0 : index
    %c0_2 = arith.constant 0 : index
    %4 = vector.load %arg1[%c0_1, %c0_2] : memref<256x32xbf16, #tpu.memory_space<vmem>>, vector<256x32xbf16>
    %c0_3 = arith.constant 0 : index
    %c0_4 = arith.constant 0 : index
    %5 = vector.load %arg2[%c0_3, %c0_4] : memref<32x256xbf16, #tpu.memory_space<vmem>>, vector<32x256xbf16>
    %cst = arith.constant dense<0.000000e+00> : vector<256x256xf32>
    %6 = tpu.matmul %4, %5, %cst {dimension_numbers = #tpu.dot_dimension_numbers<[1], [0], [0], [1], [0, 0, 1, 1], [], []>} : vector<256x32xbf16>, vector<32x256xbf16>, vector<256x256xf32> -> vector<256x256xf32>
    %c0_5 = arith.constant 0 : index
    %c0_6 = arith.constant 0 : index
    %7 = vector.load %arg3[%c0_5, %c0_6] : memref<256x1xf32, #tpu.memory_space<vmem>>, vector<256x1xf32>
    %8 = vector.broadcast %7 : vector<256x1xf32> to vector<256x256xf32>
    %9 = vector.broadcast %1 : vector<1x256xf32> to vector<256x256xf32>
    %10 = arith.mulf %8, %9 : vector<256x256xf32>
    %11 = arith.addf %6, %10 : vector<256x256xf32>
    %12 = vector.broadcast %2 : vector<1x256xf32> to vector<256x256xf32>
    %13 = arith.addf %11, %12 : vector<256x256xf32>
    %cst_7 = arith.constant 0.000000e+00 : f32
    %14 = vector.broadcast %cst_7 : f32 to vector<256x256xf32>
    %15 = arith.cmpf oge, %13, %14 : vector<256x256xf32>
    %16 = vector.broadcast %3 : vector<1x256xf32> to vector<256x256xf32>
    %17 = arith.mulf %16, %13 : vector<256x256xf32>
    %18 = arith.select %15, %13, %17 : vector<256x256xi1>, vector<256x256xf32>
    %c0_8 = arith.constant 0 : index
    %c0_9 = arith.constant 0 : index
    %19 = vector.load %arg5[%c0_8, %c0_9] : memref<256x256xf32, #tpu.memory_space<vmem>>, vector<256x256xf32>
    tpu.vector_store %arg5[%c0_8, %c0_9], %18 {strides = array<i32>} : memref<256x256xf32, #tpu.memory_space<vmem>>, vector<256x256xf32>,
    return
  }
  func.func @transform_0(%arg0: i32) -> (i32, i32) {
    %c0_i32 = arith.constant 0 : i32
    %c0_i32_0 = arith.constant 0 : i32
    %c0_i32_1 = arith.constant 0 : i32
    return %c0_i32, %c0_i32_0 : i32, i32
  }
  func.func @transform_1(%arg0: i32) -> (i32, i32) {
    %c0_i32 = arith.constant 0 : i32
    %c0_i32_0 = arith.constant 0 : i32
    %c0_i32_1 = arith.constant 0 : i32
    return %c0_i32, %c0_i32_0 : i32, i32
  }
  func.func @transform_2(%arg0: i32) -> (i32, i32) {
    %c0_i32 = arith.constant 0 : i32
    %c0_i32_0 = arith.constant 0 : i32
    %c0_i32_1 = arith.constant 0 : i32
    return %c0_i32, %c0_i32_0 : i32, i32
  }
  func.func @transform_3(%arg0: i32) -> (i32, i32) {
    %c0_i32 = arith.constant 0 : i32
    %c0_i32_0 = arith.constant 0 : i32
    %c0_i32_1 = arith.constant 0 : i32
    return %c0_i32, %c0_i32_0 : i32, i32
  }
  func.func @transform_4(%arg0: i32) -> (i32, i32) {
    %c0_i32 = arith.constant 0 : i32
    %c0_i32_0 = arith.constant 0 : i32
    %c0_i32_1 = arith.constant 0 : i32
    return %c0_i32, %c0_i32_0 : i32, i32
  }
}

</mosaic_0001>

<bundles_post_ra>
// kernel: tpu_custom_call.1
= control target key start
LH: loop header
LB: loop body
LE: loop exit
PB: predicated region body
PF: predicated region fallthrough
CT: control target
= control target key end

     0   :  { %v1137_v2 = vmov 0   ;;  %vm431_vm0 = vcmask 261120   ;;  %s1818_s0 = inlined_call_operand.vmem [shape: bf16[256,32], index: 0, kind: input, shape index: {}]   ;;  %s1819_s1 = inlined_call_operand.vmem [shape: bf16[32,256], index: 1, kind: input, shape index: {}]   ;;  %s1820_s2 = inlined_call_operand.vmem [shape: f32[256,1], index: 2, kind: input, shape index: {}]   ;;  %s1821_s3 = inlined_call_operand.vmem [shape: f32[3,256], index: 3, kind: input, shape index: {}]   ;;  %s1822_s4 = inlined_call_operand.hbm [shape: f32[256,256], index: 4, kind: output, shape index: {}]  }
   0x1   :  { %v1091_v0 = vld [vmem:[%s1819_s1 + $0x4] ss:$8 sps:$4 sm:$0xff]   ;;  %v1093_v1 = vld [vmem:[%s1819_s1] ss:$8 sps:$4 sm:$0xff]   ;;  %512 = vmatprep.mubr.bf16.mxu0 %v1137_v2  ;;  %592 = vmatprep.mubr.bf16.mxu1 %v1137_v2  ;;  %v1094_v3 = vld [vmem:[%s1819_s1 + $0x14] ss:$8 sps:$4 sm:$0xff]  }
   0x2   :  { %480 = vmatprep.subr.bf16.mxu0 %v1091_v0  ;;  %1081 = vmatprep.subr.bf16.mxu1 %v1091_v0  ;;  %v1096_v4 = vld [vmem:[%s1819_s1 + $0x10] ss:$8 sps:$4 sm:$0xff]   ;;  %v1097_v5 = vld [vmem:[%s1818_s0] sm:$0xff]   ;;  %v1099_v10 = vld [vmem:[%s1818_s0 + $0x8] sm:$0xff]  }
   0x3   :  { %481 = vmatpush1.bf16.msra.mxu0 %v1093_v1  ;;  %1083 = vmatpush1.bf16.msra.mxu1 %v1093_v1  ;;  %v1098_v6 = vld [vmem:[%s1818_s0 + $0x40] sm:$0xff]   ;;  %v58_v7 = vld [vmem:[%s1820_s2 + $0x10] sm:$0xff]  ;;  %v59_v9 = vld [vmem:[%s1820_s2 + $0x18] sm:$0xff] }
   0x4   :  { %482 = vmatprep.subr.bf16.mxu0 %v1094_v3  ;;  %1082 = vmatprep.subr.bf16.mxu1 %v1094_v3  ;;  %v56_v8 = vld [vmem:[%s1820_s2] sm:$0xff]  ;;  %v57_v11 = vld [vmem:[%s1820_s2 + $0x8] sm:$0xff]  ;;  %v63_v15 = vld [vmem:[%s1820_s2 + $0x38] sm:$0xff] }
   0x5   :  { %1090 = vset.pattern.permute.xlu1 %v1137_v2  ;;  %1089 = vset.pattern.permute.xlu0 %v1137_v2  ;;  %v1100_v12 = vld [vmem:[%s1818_s0 + $0x48] sm:$0xff]   ;;  %v60_v14 = vld [vmem:[%s1820_s2 + $0x20] sm:$0xff]  ;;  %v1101_v16 = vld [vmem:[%s1818_s0 + $0x10] sm:$0xff]  }
   0x6   :  { %100 = vperm.xlu1 %1090, %v58_v7   ;;  %90 = vperm.xlu0 %1089, %v56_v8   ;;  %v61_v13 = vld [vmem:[%s1820_s2 + $0x28] sm:$0xff]  ;;  %v62_v17 = vld [vmem:[%s1820_s2 + $0x30] sm:$0xff]  ;;  %v64_v20 = vld [vmem:[%s1820_s2 + $0x40] sm:$0xff] }
   0x7   :  { %483 = vmatpush1.bf16.msra.mxu0 %v1096_v4  ;;  %1084 = vmatpush1.bf16.msra.mxu1 %v1096_v4  ;;  %v1102_v18 = vld [vmem:[%s1818_s0 + $0x50] sm:$0xff]   ;;  %v65_v19 = vld [vmem:[%s1820_s2 + $0x48] sm:$0xff]  ;;  %v67_v21 = vld [vmem:[%s1820_s2 + $0x58] sm:$0xff] }
   0x8   :  { %v66_v22 = vld [vmem:[%s1820_s2 + $0x50] sm:$0xff] }
   0xa   :  { %1065 = vmatmul.mubr.msk.bf16.vlgmr.msra.gmra.mrb[0].mxu0 %vm431_vm0, %v1097_v5  ;;  %1073 = vmatmul.mubr.msk.bf16.vlgmr.msra.gmra.mrb[0].mxu1 %vm431_vm0, %v1098_v6 }
   0xb   :  { %522 = vmatprep.mubr.bf16.mxu0 %v1137_v2  ;;  %602 = vmatprep.mubr.bf16.mxu1 %v1137_v2 }
   0xc   :  { %105 = vperm.xlu1 %1090, %v59_v9   ;;  %95 = vperm.xlu0 %1089, %v57_v11  }
  0x10   :  { %115 = vperm.xlu1 %1090, %v61_v13   ;;  %110 = vperm.xlu0 %1089, %v60_v14  }
  0x12   :  { %1066 = vmatmul.mubr.msk.bf16.gmra.mrb[4].mxu0 %vm431_vm0, %v1099_v10  ;;  %1074 = vmatmul.mubr.msk.bf16.gmra.mrb[4].mxu1 %vm431_vm0, %v1100_v12 }
  0x13   :  { %532 = vmatprep.mubr.bf16.mxu0 %v1137_v2  ;;  %612 = vmatprep.mubr.bf16.mxu1 %v1137_v2 }
  0x14   :  { %125 = vperm.xlu1 %1090, %v63_v15   ;;  %120 = vperm.xlu0 %1089, %v62_v17  }
  0x18   :  { %135 = vperm.xlu1 %1090, %v65_v19   ;;  %130 = vperm.xlu0 %1089, %v64_v20  }
  0x1a   :  { %1067 = vmatmul.mubr.msk.bf16.gmra.mrb[8].mxu0 %vm431_vm0, %v1101_v16  ;;  %1075 = vmatmul.mubr.msk.bf16.gmra.mrb[8].mxu1 %vm431_vm0, %v1102_v18 }
  0x1b   :  { %542 = vmatprep.mubr.bf16.mxu0 %v1137_v2  ;;  %622 = vmatprep.mubr.bf16.mxu1 %v1137_v2 }
  0x1c   :  { %145 = vperm.xlu1 %1090, %v67_v21  }
  0x1d   :  { %9 = vsyncpa [#allocation3], 0  ;;  %v1103_v23 = vld [vmem:[%s1818_s0 + $0x18] sm:$0xff]   ;;  %v69_v25 = vld [vmem:[%s1820_s2 + $0x68] sm:$0xff]  ;;  %140 = vperm.xlu0 %1089, %v66_v22   ;;  %v249_v56 = vlaneseq }
  0x1e   :  { %v1104_v24 = vld [vmem:[%s1818_s0 + $0x58] sm:$0xff]   ;;  %v68_v26 = vld [vmem:[%s1820_s2 + $0x60] sm:$0xff]  ;;  %v70_v28 = vld [vmem:[%s1820_s2 + $0x70] sm:$0xff] }
  0x1f   :  { %v71_v27 = vld [vmem:[%s1820_s2 + $0x78] sm:$0xff]  ;;  %v1105_v29 = vld [vmem:[%s1818_s0 + $0x20] sm:$0xff]   ;;  %v73_v31 = vld [vmem:[%s1820_s2 + $0x88] sm:$0xff]  ;;  %v250_v59 = vshrl.u32 %v249_v56, 7 }
  0x20   :  { %155 = vperm.xlu1 %1090, %v69_v25   ;;  %v1106_v30 = vld [vmem:[%s1818_s0 + $0x60] sm:$0xff]   ;;  %v75_v33 = vld [vmem:[%s1820_s2 + $0x98] sm:$0xff]  ;;  %v74_v34 = vld [vmem:[%s1820_s2 + $0x90] sm:$0xff] }
  0x21   :  { %150 = vperm.xlu0 %1089, %v68_v26   ;;  %v72_v32 = vld [vmem:[%s1820_s2 + $0x80] sm:$0xff]  ;;  %v1107_v35 = vld [vmem:[%s1818_s0 + $0x28] sm:$0xff]   ;;  %v79_v39 = vld [vmem:[%s1820_s2 + $0xb8] sm:$0xff]  ;;  %v251_v62 = vsub.s32 0, %v250_v59  ;;  %v255_v63 = vsub.s32 4, %v250_v59 }
  0x22   :  { %1068 = vmatmul.mubr.msk.bf16.gmra.mrb[12].mxu0 %vm431_vm0, %v1103_v23  ;;  %1076 = vmatmul.mubr.msk.bf16.gmra.mrb[12].mxu1 %vm431_vm0, %v1104_v24  ;;  %v1108_v36 = vld [vmem:[%s1818_s0 + $0x68] sm:$0xff]   ;;  %v76_v38 = vld [vmem:[%s1820_s2 + $0xa0] sm:$0xff]  ;;  %v78_v40 = vld [vmem:[%s1820_s2 + $0xb0] sm:$0xff] }
  0x23   :  { %552 = vmatprep.mubr.bf16.mxu0 %v1137_v2  ;;  %632 = vmatprep.mubr.bf16.mxu1 %v1137_v2  ;;  %v77_v37 = vld [vmem:[%s1820_s2 + $0xa8] sm:$0xff]  ;;  %v1109_v41 = vld [vmem:[%s1818_s0 + $0x30] sm:$0xff]   ;;  %v80_v44 = vld [vmem:[%s1820_s2 + $0xc0] sm:$0xff] }
  0x24   :  { %165 = vperm.xlu1 %1090, %v71_v27   ;;  %v1110_v42 = vld [vmem:[%s1818_s0 + $0x70] sm:$0xff]   ;;  %v81_v43 = vld [vmem:[%s1820_s2 + $0xc8] sm:$0xff]  ;;  %v83_v45 = vld [vmem:[%s1820_s2 + $0xd8] sm:$0xff] }
  0x25   :  { %160 = vperm.xlu0 %1089, %v70_v28   ;;  %v82_v46 = vld [vmem:[%s1820_s2 + $0xd0] sm:$0xff]  ;;  %v1111_v47 = vld [vmem:[%s1818_s0 + $0x38] sm:$0xff]   ;;  %v85_v49 = vld [vmem:[%s1820_s2 + $0xe8] sm:$0xff]  ;;  %v675_v28 = vsub.s32 1, %v250_v59 }
  0x26   :  { %v1112_v48 = vld [vmem:[%s1818_s0 + $0x78] sm:$0xff]   ;;  %v84_v50 = vld [vmem:[%s1820_s2 + $0xe0] sm:$0xff]  ;;  %v86_v52 = vld [vmem:[%s1820_s2 + $0xf0] sm:$0xff] }
  0x27   :  { %v87_v51 = vld [vmem:[%s1820_s2 + $0xf8] sm:$0xff]  ;;  %v19_v0 = vld [vmem:[%s1821_s3] sm:$0x77]  ;;  %s1138_s2 = smov [#allocation2]  }
  0x28   :  { %175 = vperm.xlu1 %1090, %v73_v31   ;;  %v252_v3 = vrot.slane %v19_v0, %v251_v62  ;;  %v256_v4 = vrot.slane %v19_v0, %v255_v63  ;;  %v825_v31 = vsub.s32 6, %v250_v59  ;;  %s1034_s3 = sshll.u32 %s1138_s2, 4  ;;  %s1035_s3 = int_to_ptr.vmem [resolvable:$true] %s1034_s3 }
  0x29   :  { %170 = vperm.xlu0 %1089, %v72_v32   ;;  %s1113_s12 = scalar_lea.vmem %s1035_s3, 8192  ;;  %p1118_p1 = scmp.lt.s32.totalorder %s1035_s3, %s1035_s3 }
  0x2a   :  { %1069 = vmatmul.mubr.msk.bf16.gmra.mrb[16].mxu0 %vm431_vm0, %v1105_v29  ;;  %1077 = vmatmul.mubr.msk.bf16.gmra.mrb[16].mxu1 %vm431_vm0, %v1106_v30  ;;  %v1359_v7 = vrot.slane %v252_v3, %v251_v62  ;;  %v1361_v8 = vrot.slane %v256_v4, %v251_v62  ;;  %v679_v29 = vsub.s32 5, %v250_v59  ;;  %v821_v30 = vsub.s32 2, %v250_v59  ;;  %p1114_p0 = scmp.ne.s32.totalorder %s1035_s3, %s1113_s12  ;;  %p1119_p2 = scmp.lt.s32.totalorder %s1113_s12, %s1113_s12 }
  0x2b   :  { %562 = vmatprep.mubr.bf16.mxu0 %v1137_v2  ;;  %642 = vmatprep.mubr.bf16.mxu1 %v1137_v2 }
  0x2c   :  { %185 = vperm.xlu1 %1090, %v75_v33   ;;  %p1120_p3 = por %p1119_p2, %p1118_p1 }
  0x2d   :  { %180 = vperm.xlu0 %1089, %v74_v34   ;;  %v676_v34 = vrot.slane %v19_v0, %v675_v28 }
  0x2e   :  { %p1121_p4 = pnand %p1120_p3, %p1114_p0 }
  0x30   :  { %195 = vperm.xlu1 %1090, %v77_v37   ;;  %v826_v37 = vrot.slane %v19_v0, %v825_v31 }
  0x31   :  { %190 = vperm.xlu0 %1089, %v76_v38  }
  0x32   :  { %1070 = vmatmul.mubr.msk.bf16.gmra.mrb[20].mxu0 %vm431_vm0, %v1107_v35  ;;  %1078 = vmatmul.mubr.msk.bf16.gmra.mrb[20].mxu1 %vm431_vm0, %v1108_v36  ;;  %v680_v35 = vrot.slane %v19_v0, %v679_v29  ;;  %v822_v36 = vrot.slane %v19_v0, %v821_v30 }
  0x33   :  { %572 = vmatprep.mubr.bf16.mxu0 %v1137_v2  ;;  %652 = vmatprep.mubr.bf16.mxu1 %v1137_v2 }
  0x34   :  { %205 = vperm.xlu1 %1090, %v79_v39   ;;  %v1381_v39 = vrot.slane %v676_v34, %v675_v28 }
  0x35   :  { %200 = vperm.xlu0 %1089, %v78_v40   ;;  %v1383_v40 = vrot.slane %v680_v35, %v675_v28 }
  0x38   :  { %215 = vperm.xlu1 %1090, %v81_v43  }
  0x39   :  { %210 = vperm.xlu0 %1089, %v80_v44   ;;  %v1391_v44 = vrot.slane %v822_v36, %v821_v30 }
  0x3a   :  { %1071 = vmatmul.mubr.msk.bf16.gmra.mrb[24].mxu0 %vm431_vm0, %v1109_v41  ;;  %1079 = vmatmul.mubr.msk.bf16.gmra.mrb[24].mxu1 %vm431_vm0, %v1110_v42 }
  0x3b   :  { %582 = vmatprep.mubr.bf16.mxu0 %v1137_v2  ;;  %662 = vmatprep.mubr.bf16.mxu1 %v1137_v2 }
  0x3c   :  { %225 = vperm.xlu1 %1090, %v83_v45   ;;  %v1393_v45 = vrot.slane %v826_v37, %v821_v30 }
  0x3d   :  { %220 = vperm.xlu0 %1089, %v82_v46  }
  0x40   :  { %235 = vperm.xlu1 %1090, %v85_v49  }
  0x41   :  { %230 = vperm.xlu0 %1089, %v84_v50  }
  0x42   :  { %1072 = vmatmul.mubr.msk.bf16.gmra.mrb[28].mxu0 %vm431_vm0, %v1111_v47  ;;  %1080 = vmatmul.mubr.msk.bf16.gmra.mrb[28].mxu1 %vm431_vm0, %v1112_v48 }
  0x44   :  { %245 = vperm.xlu1 %1090, %v87_v51  }
  0x45   :  { %240 = vperm.xlu0 %1089, %v86_v52  }
  0x85   :  { %v101_v53 = vpop.permute.xlu1 %100  ;;  %v91_v54 = vpop.permute.xlu0 %90 }
  0x86   :  { %v1386_v41 = vmul.f32 %v1359_v7, %v101_v53  ;;  %v1389_v42 = vmul.f32 %v1361_v8, %v101_v53  ;;  %v267_v46 = vmul.f32 %v1359_v7, %v91_v54  ;;  %v1397_v47 = vmul.f32 %v1361_v8, %v91_v54 }
  0x8b   :  { %v106_v55 = vpop.permute.xlu1 %105  ;;  %v96_v57 = vpop.permute.xlu0 %95 }
  0x8c   :  { %v1400_v48 = vmul.f32 %v1359_v7, %v106_v55  ;;  %v1403_v49 = vmul.f32 %v1361_v8, %v106_v55  ;;  %v1406_v50 = vmul.f32 %v1359_v7, %v96_v57  ;;  %v1409_v51 = vmul.f32 %v1361_v8, %v96_v57 }
  0x8f   :  { %v116_v58 = vpop.permute.xlu1 %115  ;;  %v111_v60 = vpop.permute.xlu0 %110 }
  0x90   :  { %v1412_v52 = vmul.f32 %v1359_v7, %v116_v58  ;;  %v1415_v53 = vmul.f32 %v1361_v8, %v116_v58  ;;  %v1418_v54 = vmul.f32 %v1359_v7, %v111_v60  ;;  %v1421_v56 = vmul.f32 %v1361_v8, %v111_v60 }
  0x93   :  { %v126_v61 = vpop.permute.xlu1 %125  ;;  %v121_v1 = vpop.permute.xlu0 %120 }
  0x94   :  { %v1424_v55 = vmul.f32 %v1359_v7, %v126_v61  ;;  %v1427_v59 = vmul.f32 %v1361_v8, %v126_v61  ;;  %v1430_v57 = vmul.f32 %v1359_v7, %v121_v1  ;;  %v1433_v62 = vmul.f32 %v1361_v8, %v121_v1 }
  0x97   :  { %v136_v2 = vpop.permute.xlu1 %135  ;;  %v131_v5 = vpop.permute.xlu0 %130 }
  0x98   :  { %v1436_v58 = vmul.f32 %v1359_v7, %v136_v2  ;;  %v1439_v63 = vmul.f32 %v1361_v8, %v136_v2  ;;  %v1442_v60 = vmul.f32 %v1359_v7, %v131_v5  ;;  %v1445_v0 = vmul.f32 %v1361_v8, %v131_v5 }
  0x9b   :  { %v146_v6 = vpop.permute.xlu1 %145 }
  0x9c   :  { %v141_v9 = vpop.permute.xlu0 %140  ;;  %v1448_v61 = vmul.f32 %v1359_v7, %v146_v6  ;;  %v1451_v3 = vmul.f32 %v1361_v8, %v146_v6 }
  0x9d   :  { %v1454_v4 = vmul.f32 %v1359_v7, %v141_v9 }
  0x9e   :  { %1829 = vst [vmem:[#allocation11_spill] sm:$0xff] %v1448_v61  ;;  %1830 = vst [vmem:[#allocation12_spill] sm:$0xff] %v1451_v3 }
  0x9f   :  { %v156_v10 = vpop.permute.xlu1 %155 }
  0xa0   :  { %v1364_v11 = vmul.f32 %v1359_v7, %v156_v10  ;;  %v1367_v12 = vmul.f32 %v1361_v8, %v156_v10  ;;  %v151_v13 = vpop.permute.xlu0 %150  ;;  %v1457_v10 = vmul.f32 %v1361_v8, %v141_v9 }
  0xa1   :  { %v1460_v2 = vmul.f32 %v1359_v7, %v151_v13 }
  0xa2   :  { %1823 = vst [vmem:[#allocation5_spill] sm:$0xff] %v1364_v11  ;;  %1824 = vst [vmem:[#allocation6_spill] sm:$0xff] %v1367_v12 }
  0xa3   :  { %v166_v14 = vpop.permute.xlu1 %165  ;;  %1831 = vst [vmem:[#allocation13_spill] sm:$0xff] %v1457_v10  ;;  %1832 = vst [vmem:[#allocation14_spill] sm:$0xff] %v1460_v2 }
  0xa4   :  { %v1370_v15 = vmul.f32 %v1359_v7, %v166_v14  ;;  %v1373_v16 = vmul.f32 %v1361_v8, %v166_v14  ;;  %v161_v17 = vpop.permute.xlu0 %160  ;;  %v1463_v14 = vmul.f32 %v1361_v8, %v151_v13 }
  0xa5   :  { %v1376_v18 = vmul.f32 %v1359_v7, %v161_v17  ;;  %v1379_v19 = vmul.f32 %v1361_v8, %v161_v17 }
  0xa6   :  { %1825 = vst [vmem:[#allocation7_spill] sm:$0xff] %v1370_v15  ;;  %1826 = vst [vmem:[#allocation8_spill] sm:$0xff] %v1373_v16 }
  0xa7   :  { %1827 = vst [vmem:[#allocation9_spill] sm:$0xff] %v1376_v18  ;;  %1828 = vst [vmem:[#allocation10_spill] sm:$0xff] %v1379_v19  ;;  %v176_v20 = vpop.permute.xlu1 %175 }
  0xa8   :  { %v171_v21 = vpop.permute.xlu0 %170  ;;  %1833 = vst [vmem:[#allocation15_spill] sm:$0xff] %v1463_v14  ;;  %v301_v17 = vmul.f32 %v1359_v7, %v176_v20  ;;  %v302_v28 = vmul.f32 %v1361_v8, %v176_v20 }
  0xa9   :  { %v299_v6 = vmul.f32 %v1359_v7, %v171_v21  ;;  %v300_v29 = vmul.f32 %v1361_v8, %v171_v21 }
  0xab   :  { %v186_v22 = vpop.permute.xlu1 %185 }
  0xac   :  { %v181_v23 = vpop.permute.xlu0 %180  ;;  %v1470_v30 = vmul.f32 %v1359_v7, %v186_v22  ;;  %v1473_v9 = vmul.f32 %v1361_v8, %v186_v22 }
  0xad   :  { %v1476_v31 = vmul.f32 %v1359_v7, %v181_v23  ;;  %v1479_v13 = vmul.f32 %v1361_v8, %v181_v23 }
  0xaf   :  { %v196_v24 = vpop.permute.xlu1 %195 }
  0xb0   :  { %v191_v25 = vpop.permute.xlu0 %190  ;;  %v1482_v34 = vmul.f32 %v1359_v7, %v196_v24  ;;  %v1485_v20 = vmul.f32 %v1361_v8, %v196_v24 }
  0xb1   :  { %v1488_v21 = vmul.f32 %v1359_v7, %v191_v25  ;;  %v1491_v35 = vmul.f32 %v1361_v8, %v191_v25 }
  0xb3   :  { %v206_v26 = vpop.permute.xlu1 %205 }
  0xb4   :  { %v201_v27 = vpop.permute.xlu0 %200  ;;  %v1494_v22 = vmul.f32 %v1359_v7, %v206_v26  ;;  %v1497_v36 = vmul.f32 %v1361_v8, %v206_v26 }
  0xb5   :  { %v1500_v23 = vmul.f32 %v1359_v7, %v201_v27  ;;  %v1503_v37 = vmul.f32 %v1361_v8, %v201_v27 }
  0xb7   :  { %v216_v32 = vpop.permute.xlu1 %215 }
  0xb8   :  { %v211_v33 = vpop.permute.xlu0 %210  ;;  %v1506_v24 = vmul.f32 %v1359_v7, %v216_v32  ;;  %v1509_v16 = vmul.f32 %v1361_v8, %v216_v32 }
  0xb9   :  { %v1512_v25 = vmul.f32 %v1359_v7, %v211_v33  ;;  %v1515_v15 = vmul.f32 %v1361_v8, %v211_v33 }
  0xbb   :  { %v226_v38 = vpop.permute.xlu1 %225 }
  0xbc   :  { %v221_v43 = vpop.permute.xlu0 %220  ;;  %v1518_v19 = vmul.f32 %v1359_v7, %v226_v38  ;;  %v1521_v18 = vmul.f32 %v1361_v8, %v226_v38 }
  0xbd   :  { %v1524_v27 = vmul.f32 %v1359_v7, %v221_v43  ;;  %v1527_v12 = vmul.f32 %v1361_v8, %v221_v43 }
  0xbe   :  { %1834 = vst [vmem:[#allocation16_spill] sm:$0xff] %v1518_v19  ;;  %1835 = vst [vmem:[#allocation17_spill] sm:$0xff] %v1521_v18 }
  0xbf   :  { %v236_v1 = vpop.permute.xlu1 %235  ;;  %1836 = vst [vmem:[#allocation18_spill] sm:$0xff] %v1527_v12 }
  0xc0   :  { %v231_v5 = vpop.permute.xlu0 %230  ;;  %v1530_v11 = vmul.f32 %v1359_v7, %v236_v1  ;;  %v1533_v33 = vmul.f32 %v1361_v8, %v236_v1 }
  0xc1   :  { %v1536_v14 = vmul.f32 %v1359_v7, %v231_v5  ;;  %v1539_v2 = vmul.f32 %v1361_v8, %v231_v5 }
  0xc2   :  { %1837 = vst [vmem:[#allocation19_spill] sm:$0xff] %v1530_v11  ;;  %1838 = vst [vmem:[#allocation20_spill] sm:$0xff] %v1533_v33 }
  0xc3   :  { %v246_v26 = vpop.permute.xlu1 %245  ;;  %1839 = vst [vmem:[#allocation21_spill] sm:$0xff] %v1536_v14  ;;  %1840 = vst [vmem:[#allocation22_spill] sm:$0xff] %v1539_v2 }
  0xc4   :  { %v241_v32 = vpop.permute.xlu0 %240  ;;  %v1542_v3 = vmul.f32 %v1359_v7, %v246_v26  ;;  %v1545_v43 = vmul.f32 %v1361_v8, %v246_v26 }
  0xc5   :  { %v1548_v1 = vmul.f32 %v1359_v7, %v241_v32  ;;  %v1551_v33 = vmul.f32 %v1361_v8, %v241_v32 }
  0xc6   :  { %1841 = vst [vmem:[#allocation23_spill] sm:$0xff] %v1542_v3  ;;  %1842 = vst [vmem:[#allocation24_spill] sm:$0xff] %v1545_v43 }
  0xc7   :  { %1843 = vst [vmem:[#allocation25_spill] sm:$0xff] %v1551_v33 }
  0xdd   :  { %v514_v38 = vpop.f32.mrb[0].mxu0  ;;  %v594_v18 = vpop.f32.mrb[0].mxu1 }
  0xde   :  { %v515_v19 = vadd.f32 %v514_v38, %v267_v46  ;;  %v595_v61 = vadd.f32 %v594_v18, %v299_v6  ;;  %v516_v11 = vpop.f32.mrb[1].mxu0  ;;  %v596_v12 = vpop.f32.mrb[1].mxu1 }
  0xdf   :  { %v517_v5 = vadd.f32 %v516_v11, %v1397_v47  ;;  %v597_v2 = vadd.f32 %v596_v12, %v300_v29  ;;  %v518_v14 = vpop.f32.mrb[2].mxu0  ;;  %v598_v10 = vpop.f32.mrb[2].mxu1 }
  0xe0   :  { %v691_v3 = vadd.f32 %v1381_v39, %v515_v19  ;;  %v723_v26 = vadd.f32 %v1381_v39, %v595_v61  ;;  %v519_v46 = vadd.f32 %v518_v14, %v1406_v50  ;;  %v599_v18 = vadd.f32 %v598_v10, %v301_v17  ;;  %v520_v6 = vpop.f32.mrb[3].mxu0  ;;  %v600_v38 = vpop.f32.mrb[3].mxu1 }
  0xe1   :  { %v692_v7 = vadd.f32 %v1383_v40, %v517_v5  ;;  %v724_v43 = vadd.f32 %v1383_v40, %v597_v2  ;;  %v521_v8 = vadd.f32 %v520_v6, %v1409_v51  ;;  %v601_v32 = vadd.f32 %v600_v38, %v302_v28 }
  0xe2   :  { %vm755_vm1 = vcmp.ge.f32.partialorder %v691_v3, 0.0  ;;  %v837_v11 = vmul.f32 %v1391_v44, %v691_v3  ;;  %vm787_vm2 = vcmp.ge.f32.partialorder %v723_v26, 0.0  ;;  %v869_v12 = vmul.f32 %v1391_v44, %v723_v26 }
  0xe3   :  { %vm756_vm3 = vcmp.ge.f32.partialorder %v692_v7, 0.0  ;;  %v838_v19 = vmul.f32 %v1393_v45, %v692_v7  ;;  %vm788_vm4 = vcmp.ge.f32.partialorder %v724_v43, 0.0  ;;  %v870_v47 = vmul.f32 %v1393_v45, %v724_v43 }
  0xe4   :  { %v901_v50 = vsel %vm755_vm1, %v691_v3, %v837_v11  ;;  %v933_v61 = vsel %vm787_vm2, %v723_v26, %v869_v12  ;;  %v693_v10 = vadd.f32 %v1381_v39, %v519_v46  ;;  %v725_v2 = vadd.f32 %v1381_v39, %v599_v18 }
  0xe5   :  { %965 = vst [vmem:[#allocation2] sm:$0xff] %v901_v50  ;;  %997 = vst [vmem:[#allocation2 + $0x100] sm:$0xff] %v933_v61  ;;  %v902_v51 = vsel %vm756_vm3, %v692_v7, %v838_v19  ;;  %v934_v14 = vsel %vm788_vm4, %v724_v43, %v870_v47  ;;  %v694_v17 = vadd.f32 %v1383_v40, %v521_v8  ;;  %v524_v29 = vpop.f32.mrb[4].mxu0  ;;  %v604_v5 = vpop.f32.mrb[4].mxu1 }
  0xe6   :  { %v726_v28 = vadd.f32 %v1383_v40, %v601_v32  ;;  %966 = vst [vmem:[#allocation2 + $0x8] sm:$0xff] %v902_v51  ;;  %998 = vst [vmem:[#allocation2 + $0x108] sm:$0xff] %v934_v14  ;;  %vm757_vm5 = vcmp.ge.f32.partialorder %v693_v10, 0.0  ;;  %v839_v3 = vmul.f32 %v1391_v44, %v693_v10  ;;  %vm789_vm6 = vcmp.ge.f32.partialorder %v725_v2, 0.0  ;;  %v526_v46 = vpop.f32.mrb[5].mxu0  ;;  %v606_v18 = vpop.f32.mrb[5].mxu1 }
  0xe7   :  { %v871_v26 = vmul.f32 %v1391_v44, %v725_v2  ;;  %vm758_vm7 = vcmp.ge.f32.partialorder %v694_v17, 0.0  ;;  %v840_v6 = vmul.f32 %v1393_v45, %v694_v17  ;;  %v528_v38 = vpop.f32.mrb[6].mxu0  ;;  %v608_v7 = vpop.f32.mrb[6].mxu1  ;;  %v525_v11 = vadd.f32 %v524_v29, %v1386_v41 }
  0xe8   :  { %vm790_vm8 = vcmp.ge.f32.partialorder %v726_v28, 0.0  ;;  %v872_v43 = vmul.f32 %v1393_v45, %v726_v28  ;;  %v903_v8 = vsel %vm757_vm5, %v693_v10, %v839_v3  ;;  %v605_v12 = vadd.f32 %v604_v5, %v1476_v31  ;;  %v530_v19 = vpop.f32.mrb[7].mxu0  ;;  %v610_v47 = vpop.f32.mrb[7].mxu1 }
  0xe9   :  { %v935_v32 = vsel %vm789_vm6, %v725_v2, %v871_v26  ;;  %967 = vst [vmem:[#allocation2 + $0x10] sm:$0xff] %v903_v8  ;;  %v904_v50 = vsel %vm758_vm7, %v694_v17, %v840_v6  ;;  %v527_v51 = vadd.f32 %v526_v46, %v1389_v42  ;;  %v607_v14 = vadd.f32 %v606_v18, %v1479_v13 }
  0xea   :  { %999 = vst [vmem:[#allocation2 + $0x110] sm:$0xff] %v935_v32  ;;  %v936_v61 = vsel %vm790_vm8, %v726_v28, %v872_v43  ;;  %968 = vst [vmem:[#allocation2 + $0x18] sm:$0xff] %v904_v50  ;;  %v695_v33 = vadd.f32 %v1381_v39, %v525_v11  ;;  %v727_v10 = vadd.f32 %v1381_v39, %v605_v12 }
  0xeb   :  { %1000 = vst [vmem:[#allocation2 + $0x118] sm:$0xff] %v936_v61  ;;  %v529_v41 = vadd.f32 %v528_v38, %v1400_v48  ;;  %v609_v31 = vadd.f32 %v608_v7, %v1470_v30  ;;  %v696_v2 = vadd.f32 %v1383_v40, %v527_v51  ;;  %v728_v29 = vadd.f32 %v1383_v40, %v607_v14 }
  0xec   :  { %v531_v17 = vadd.f32 %v530_v19, %v1403_v49  ;;  %v611_v42 = vadd.f32 %v610_v47, %v1473_v9  ;;  %vm759_vm9 = vcmp.ge.f32.partialorder %v695_v33, 0.0  ;;  %v841_v13 = vmul.f32 %v1391_v44, %v695_v33 }
  0xed   :  { %vm791_vm10 = vcmp.ge.f32.partialorder %v727_v10, 0.0  ;;  %v873_v28 = vmul.f32 %v1391_v44, %v727_v10  ;;  %vm760_vm11 = vcmp.ge.f32.partialorder %v696_v2, 0.0  ;;  %v842_v5 = vmul.f32 %v1393_v45, %v696_v2  ;;  %v534_v30 = vpop.f32.mrb[8].mxu0  ;;  %v614_v3 = vpop.f32.mrb[8].mxu1 }
  0xee   :  { %vm792_vm12 = vcmp.ge.f32.partialorder %v728_v29, 0.0  ;;  %v874_v48 = vmul.f32 %v1393_v45, %v728_v29  ;;  %v905_v26 = vsel %vm759_vm9, %v695_v33, %v841_v13  ;;  %v697_v49 = vadd.f32 %v1381_v39, %v529_v41  ;;  %v536_v18 = vpop.f32.mrb[9].mxu0  ;;  %v616_v6 = vpop.f32.mrb[9].mxu1 }
  0xef   :  { %v937_v46 = vsel %vm791_vm10, %v727_v10, %v873_v28  ;;  %v729_v9 = vadd.f32 %v1381_v39, %v609_v31  ;;  %969 = vst [vmem:[#allocation2 + $0x20] sm:$0xff] %v905_v26  ;;  %v906_v43 = vsel %vm760_vm11, %v696_v2, %v842_v5  ;;  %v698_v7 = vadd.f32 %v1383_v40, %v531_v17  ;;  %v538_v32 = vpop.f32.mrb[10].mxu0  ;;  %v618_v11 = vpop.f32.mrb[10].mxu1 }
  0xf0   :  { %1001 = vst [vmem:[#allocation2 + $0x120] sm:$0xff] %v937_v46  ;;  %v938_v38 = vsel %vm792_vm12, %v728_v29, %v874_v48  ;;  %v730_v8 = vadd.f32 %v1383_v40, %v611_v42  ;;  %970 = vst [vmem:[#allocation2 + $0x28] sm:$0xff] %v906_v43  ;;  %vm761_vm13 = vcmp.ge.f32.partialorder %v697_v49, 0.0  ;;  %v843_v33 = vmul.f32 %v1391_v44, %v697_v49  ;;  %v540_v19 = vpop.f32.mrb[11].mxu0  ;;  %v620_v47 = vpop.f32.mrb[11].mxu1 }
  0xf1   :  { %1002 = vst [vmem:[#allocation2 + $0x128] sm:$0xff] %v938_v38  ;;  %vm793_vm14 = vcmp.ge.f32.partialorder %v729_v9, 0.0  ;;  %v875_v12 = vmul.f32 %v1391_v44, %v729_v9  ;;  %vm762_vm15 = vcmp.ge.f32.partialorder %v698_v7, 0.0  ;;  %v844_v50 = vmul.f32 %v1393_v45, %v698_v7 }
  0xf2   :  { %vm794_vm0 = vcmp.ge.f32.partialorder %v730_v8, 0.0  ;;  %v876_v61 = vmul.f32 %v1393_v45, %v730_v8  ;;  %v907_v51 = vsel %vm761_vm13, %v697_v49, %v843_v33  ;;  %v535_v10 = vadd.f32 %v534_v30, %v1418_v54 }
  0xf3   :  { %v939_v14 = vsel %vm793_vm14, %v729_v9, %v875_v12  ;;  %v615_v41 = vadd.f32 %v614_v3, %v1488_v21  ;;  %971 = vst [vmem:[#allocation2 + $0x30] sm:$0xff] %v907_v51  ;;  %v908_v31 = vsel %vm762_vm15, %v698_v7, %v844_v50  ;;  %v537_v29 = vadd.f32 %v536_v18, %v1421_v56 }
  0xf4   :  { %1003 = vst [vmem:[#allocation2 + $0x130] sm:$0xff] %v939_v14  ;;  %v940_v2 = vsel %vm794_vm0, %v730_v8, %v876_v61  ;;  %v617_v17 = vadd.f32 %v616_v6, %v1491_v35  ;;  %972 = vst [vmem:[#allocation2 + $0x38] sm:$0xff] %v908_v31  ;;  %v699_v42 = vadd.f32 %v1381_v39, %v535_v10 }
  0xf5   :  { %1004 = vst [vmem:[#allocation2 + $0x138] sm:$0xff] %v940_v2  ;;  %v731_v13 = vadd.f32 %v1381_v39, %v615_v41  ;;  %v539_v28 = vadd.f32 %v538_v32, %v1412_v52  ;;  %v619_v54 = vadd.f32 %v618_v11, %v1482_v34  ;;  %v700_v21 = vadd.f32 %v1383_v40, %v537_v29  ;;  %v544_v30 = vpop.f32.mrb[12].mxu0  ;;  %v624_v35 = vpop.f32.mrb[12].mxu1 }
  0xf6   :  { %v732_v5 = vadd.f32 %v1383_v40, %v617_v17  ;;  %v541_v48 = vadd.f32 %v540_v19, %v1415_v53  ;;  %v621_v56 = vadd.f32 %v620_v47, %v1485_v20  ;;  %vm763_vm1 = vcmp.ge.f32.partialorder %v699_v42, 0.0  ;;  %v546_v46 = vpop.f32.mrb[13].mxu0  ;;  %v626_v52 = vpop.f32.mrb[13].mxu1 }
  0xf7   :  { %v845_v3 = vmul.f32 %v1391_v44, %v699_v42  ;;  %vm795_vm2 = vcmp.ge.f32.partialorder %v731_v13, 0.0  ;;  %v877_v26 = vmul.f32 %v1391_v44, %v731_v13  ;;  %vm764_vm3 = vcmp.ge.f32.partialorder %v700_v21, 0.0  ;;  %v548_v9 = vpop.f32.mrb[14].mxu0  ;;  %v628_v53 = vpop.f32.mrb[14].mxu1 }
  0xf8   :  { %v846_v34 = vmul.f32 %v1393_v45, %v700_v21  ;;  %vm796_vm4 = vcmp.ge.f32.partialorder %v732_v5, 0.0  ;;  %v878_v49 = vmul.f32 %v1393_v45, %v732_v5  ;;  %v701_v6 = vadd.f32 %v1381_v39, %v539_v28  ;;  %v550_v38 = vpop.f32.mrb[15].mxu0  ;;  %v630_v7 = vpop.f32.mrb[15].mxu1 }
  0xf9   :  { %v909_v18 = vsel %vm763_vm1, %v699_v42, %v845_v3  ;;  %v941_v20 = vsel %vm795_vm2, %v731_v13, %v877_v26  ;;  %v733_v43 = vadd.f32 %v1381_v39, %v619_v54  ;;  %v702_v11 = vadd.f32 %v1383_v40, %v541_v48 }
  0xfa   :  { %973 = vst [vmem:[#allocation2 + $0x40] sm:$0xff] %v909_v18  ;;  %1005 = vst [vmem:[#allocation2 + $0x140] sm:$0xff] %v941_v20  ;;  %v910_v8 = vsel %vm764_vm3, %v700_v21, %v846_v34  ;;  %v942_v32 = vsel %vm796_vm4, %v732_v5, %v878_v49  ;;  %v734_v33 = vadd.f32 %v1383_v40, %v621_v56  ;;  %vm765_vm5 = vcmp.ge.f32.partialorder %v701_v6, 0.0 }
  0xfb   :  { %974 = vst [vmem:[#allocation2 + $0x48] sm:$0xff] %v910_v8  ;;  %1006 = vst [vmem:[#allocation2 + $0x148] sm:$0xff] %v942_v32  ;;  %v847_v12 = vmul.f32 %v1391_v44, %v701_v6  ;;  %vm797_vm6 = vcmp.ge.f32.partialorder %v733_v43, 0.0  ;;  %v879_v19 = vmul.f32 %v1391_v44, %v733_v43  ;;  %vm766_vm7 = vcmp.ge.f32.partialorder %v702_v11, 0.0 }
  0xfc   :  { %v848_v47 = vmul.f32 %v1393_v45, %v702_v11  ;;  %vm798_vm8 = vcmp.ge.f32.partialorder %v734_v33, 0.0  ;;  %v880_v50 = vmul.f32 %v1393_v45, %v734_v33  ;;  %v545_v14 = vadd.f32 %v544_v30, %v1430_v57 }
  0xfd   :  { %v911_v61 = vsel %vm765_vm5, %v701_v6, %v847_v12  ;;  %v943_v51 = vsel %vm797_vm6, %v733_v43, %v879_v19  ;;  %v625_v10 = vadd.f32 %v624_v35, %v1500_v23  ;;  %v547_v2 = vadd.f32 %v546_v46, %v1433_v62  ;;  %v554_v17 = vpop.f32.mrb[16].mxu0  ;;  %v634_v42 = vpop.f32.mrb[16].mxu1 }
  0xfe   :  { %975 = vst [vmem:[#allocation2 + $0x50] sm:$0xff] %v911_v61  ;;  %1007 = vst [vmem:[#allocation2 + $0x150] sm:$0xff] %v943_v51  ;;  %v912_v41 = vsel %vm766_vm7, %v702_v11, %v848_v47  ;;  %v944_v31 = vsel %vm798_vm8, %v734_v33, %v880_v50  ;;  %v627_v29 = vadd.f32 %v626_v52, %v1503_v37  ;;  %v556_v54 = vpop.f32.mrb[17].mxu0  ;;  %v636_v21 = vpop.f32.mrb[17].mxu1 }
  0xff   :  { %976 = vst [vmem:[#allocation2 + $0x58] sm:$0xff] %v912_v41  ;;  %1008 = vst [vmem:[#allocation2 + $0x158] sm:$0xff] %v944_v31  ;;  %v703_v13 = vadd.f32 %v1381_v39, %v545_v14  ;;  %v735_v28 = vadd.f32 %v1381_v39, %v625_v10  ;;  %v549_v57 = vadd.f32 %v548_v9, %v1424_v55  ;;  %v558_v56 = vpop.f32.mrb[18].mxu0  ;;  %v638_v30 = vpop.f32.mrb[18].mxu1 }
 0x100   :  { %v629_v23 = vadd.f32 %v628_v53, %v1494_v22  ;;  %v704_v5 = vadd.f32 %v1383_v40, %v547_v2  ;;  %v736_v62 = vadd.f32 %v1383_v40, %v627_v29  ;;  %v551_v37 = vadd.f32 %v550_v38, %v1427_v59  ;;  %v560_v3 = vpop.f32.mrb[19].mxu0  ;;  %v640_v22 = vpop.f32.mrb[19].mxu1 }
 0x101   :  { %v631_v48 = vadd.f32 %v630_v7, %v1497_v36  ;;  %vm767_vm9 = vcmp.ge.f32.partialorder %v703_v13, 0.0  ;;  %v849_v35 = vmul.f32 %v1391_v44, %v703_v13  ;;  %vm799_vm10 = vcmp.ge.f32.partialorder %v735_v28, 0.0 }
 0x102   :  { %v881_v55 = vmul.f32 %v1391_v44, %v735_v28  ;;  %vm768_vm11 = vcmp.ge.f32.partialorder %v704_v5, 0.0  ;;  %v850_v26 = vmul.f32 %v1393_v45, %v704_v5  ;;  %vm800_vm12 = vcmp.ge.f32.partialorder %v736_v62, 0.0 }
 0x103   :  { %v882_v46 = vmul.f32 %v1393_v45, %v736_v62  ;;  %v913_v52 = vsel %vm767_vm9, %v703_v13, %v849_v35  ;;  %v705_v36 = vadd.f32 %v1381_v39, %v549_v57  ;;  %v737_v34 = vadd.f32 %v1381_v39, %v629_v23 }
 0x104   :  { %v945_v59 = vsel %vm799_vm10, %v735_v28, %v881_v55  ;;  %977 = vst [vmem:[#allocation2 + $0x60] sm:$0xff] %v913_v52  ;;  %v914_v49 = vsel %vm768_vm11, %v704_v5, %v850_v26  ;;  %v706_v53 = vadd.f32 %v1383_v40, %v551_v37  ;;  %v738_v18 = vadd.f32 %v1383_v40, %v631_v48 }
 0x105   :  { %1009 = vst [vmem:[#allocation2 + $0x160] sm:$0xff] %v945_v59  ;;  %v946_v9 = vsel %vm800_vm12, %v736_v62, %v882_v46  ;;  %978 = vst [vmem:[#allocation2 + $0x68] sm:$0xff] %v914_v49  ;;  %vm769_vm13 = vcmp.ge.f32.partialorder %v705_v36, 0.0  ;;  %v851_v20 = vmul.f32 %v1391_v44, %v705_v36  ;;  %vm801_vm14 = vcmp.ge.f32.partialorder %v737_v34, 0.0  ;;  %v1644_v7 = vpop.f32.mrb[20].mxu0  ;;  %v1646_v8 = vpop.f32.mrb[20].mxu1 }
 0x106   :  { %1010 = vst [vmem:[#allocation2 + $0x168] sm:$0xff] %v946_v9  ;;  %v883_v6 = vmul.f32 %v1391_v44, %v737_v34  ;;  %vm770_vm15 = vcmp.ge.f32.partialorder %v706_v53, 0.0  ;;  %v852_v43 = vmul.f32 %v1393_v45, %v706_v53  ;;  %vm802_vm0 = vcmp.ge.f32.partialorder %v738_v18, 0.0  ;;  %v1650_v19 = vpop.f32.mrb[21].mxu0  ;;  %v1652_v47 = vpop.f32.mrb[21].mxu1 }
 0x107   :  { %v884_v38 = vmul.f32 %v1393_v45, %v738_v18  ;;  %v915_v32 = vsel %vm769_vm13, %v705_v36, %v851_v20  ;;  %v555_v33 = vadd.f32 %v554_v17, %v1442_v60  ;;  %v635_v12 = vadd.f32 %v634_v42, %v1512_v25  ;;  %v1656_v10 = vpop.f32.mrb[22].mxu0  ;;  %v1658_v41 = vpop.f32.mrb[22].mxu1 }
 0x108   :  { %v947_v11 = vsel %vm801_vm14, %v737_v34, %v883_v6  ;;  %979 = vst [vmem:[#allocation2 + $0x70] sm:$0xff] %v915_v32  ;;  %v916_v50 = vsel %vm770_vm15, %v706_v53, %v852_v43  ;;  %v557_v51 = vadd.f32 %v556_v54, %v1445_v0  ;;  %v637_v14 = vadd.f32 %v636_v21, %v1515_v15  ;;  %v570_v29 = vpop.f32.mrb[23].mxu0  ;;  %v650_v17 = vpop.f32.mrb[23].mxu1  ;;  %v1844_v6 = vld [vmem:[#allocation13_spill] sm:$0xff] }
 0x109   :  { %1011 = vst [vmem:[#allocation2 + $0x170] sm:$0xff] %v947_v11  ;;  %v948_v61 = vsel %vm802_vm0, %v738_v18, %v884_v38  ;;  %980 = vst [vmem:[#allocation2 + $0x78] sm:$0xff] %v916_v50  ;;  %v707_v60 = vadd.f32 %v1381_v39, %v555_v33  ;;  %v739_v25 = vadd.f32 %v1381_v39, %v635_v12  ;;  %v1845_v38 = vld [vmem:[#allocation18_spill] sm:$0xff]  ;;  %v1847_v11 = vld [vmem:[#allocation16_spill] sm:$0xff] }
 0x10a   :  { %1012 = vst [vmem:[#allocation2 + $0x178] sm:$0xff] %v948_v61  ;;  %v559_v31 = vadd.f32 %v558_v56, %v1436_v58  ;;  %v639_v2 = vadd.f32 %v638_v30, %v1506_v24  ;;  %v708_v0 = vadd.f32 %v1383_v40, %v557_v51  ;;  %v740_v15 = vadd.f32 %v1383_v40, %v637_v14  ;;  %v1849_v51 = vld [vmem:[#allocation17_spill] sm:$0xff] }
 0x10b   :  { %v561_v42 = vadd.f32 %v560_v3, %v1439_v63  ;;  %v641_v13 = vadd.f32 %v640_v22, %v1509_v16  ;;  %vm771_vm1 = vcmp.ge.f32.partialorder %v707_v60, 0.0  ;;  %v853_v28 = vmul.f32 %v1391_v44, %v707_v60 }
 0x10c   :  { %vm803_vm2 = vcmp.ge.f32.partialorder %v739_v25, 0.0  ;;  %v885_v57 = vmul.f32 %v1391_v44, %v739_v25  ;;  %vm772_vm3 = vcmp.ge.f32.partialorder %v708_v0, 0.0  ;;  %v854_v58 = vmul.f32 %v1393_v45, %v708_v0 }
 0x10d   :  { %vm804_vm4 = vcmp.ge.f32.partialorder %v740_v15, 0.0  ;;  %v886_v24 = vmul.f32 %v1393_v45, %v740_v15  ;;  %v917_v23 = vsel %vm771_vm1, %v707_v60, %v853_v28  ;;  %v709_v21 = vadd.f32 %v1381_v39, %v559_v31  ;;  %v1676_v48 = vpop.f32.mrb[24].mxu0  ;;  %v1678_v56 = vpop.f32.mrb[24].mxu1 }
 0x10e   :  { %v949_v54 = vsel %vm803_vm2, %v739_v25, %v885_v57  ;;  %v741_v63 = vadd.f32 %v1381_v39, %v639_v2  ;;  %981 = vst [vmem:[#allocation2 + $0x80] sm:$0xff] %v917_v23  ;;  %v918_v16 = vsel %vm772_vm3, %v708_v0, %v854_v58  ;;  %v710_v62 = vadd.f32 %v1383_v40, %v561_v42  ;;  %v1682_v55 = vpop.f32.mrb[25].mxu0  ;;  %v1684_v3 = vpop.f32.mrb[25].mxu1 }
 0x10f   :  { %1013 = vst [vmem:[#allocation2 + $0x180] sm:$0xff] %v949_v54  ;;  %v950_v5 = vsel %vm804_vm4, %v740_v15, %v886_v24  ;;  %v742_v37 = vadd.f32 %v1383_v40, %v641_v13  ;;  %982 = vst [vmem:[#allocation2 + $0x88] sm:$0xff] %v918_v16  ;;  %vm773_vm5 = vcmp.ge.f32.partialorder %v709_v21, 0.0  ;;  %v855_v30 = vmul.f32 %v1391_v44, %v709_v21  ;;  %v1688_v46 = vpop.f32.mrb[26].mxu0  ;;  %v1690_v52 = vpop.f32.mrb[26].mxu1 }
 0x110   :  { %1014 = vst [vmem:[#allocation2 + $0x188] sm:$0xff] %v950_v5  ;;  %vm805_vm6 = vcmp.ge.f32.partialorder %v741_v63, 0.0  ;;  %v887_v35 = vmul.f32 %v1391_v44, %v741_v63  ;;  %vm774_vm7 = vcmp.ge.f32.partialorder %v710_v62, 0.0  ;;  %v856_v22 = vmul.f32 %v1393_v45, %v710_v62  ;;  %v1696_v9 = vpop.f32.mrb[27].mxu0  ;;  %v1698_v53 = vpop.f32.mrb[27].mxu1 }
 0x111   :  { %vm806_vm8 = vcmp.ge.f32.partialorder %v742_v37, 0.0  ;;  %v888_v26 = vmul.f32 %v1393_v45, %v742_v37  ;;  %v919_v59 = vsel %vm773_vm5, %v709_v21, %v855_v30  ;;  %v565_v34 = vadd.f32 %v1644_v7, %v1454_v4  ;;  %v1846_v7 = vld [vmem:[#allocation11_spill] sm:$0xff] }
 0x112   :  { %v951_v36 = vsel %vm805_vm6, %v741_v63, %v887_v35  ;;  %v645_v49 = vadd.f32 %v1646_v8, %v1524_v27  ;;  %983 = vst [vmem:[#allocation2 + $0x90] sm:$0xff] %v919_v59  ;;  %v920_v18 = vsel %vm774_vm7, %v710_v62, %v856_v22  ;;  %v567_v43 = vadd.f32 %v1650_v19, %v1844_v6  ;;  %v1848_v19 = vld [vmem:[#allocation12_spill] sm:$0xff]  ;;  %v1850_v35 = vld [vmem:[#allocation14_spill] sm:$0xff] }
 0x113   :  { %1015 = vst [vmem:[#allocation2 + $0x190] sm:$0xff] %v951_v36  ;;  %v952_v20 = vsel %vm806_vm8, %v742_v37, %v888_v26  ;;  %v647_v32 = vadd.f32 %v1652_v47, %v1845_v38  ;;  %984 = vst [vmem:[#allocation2 + $0x98] sm:$0xff] %v920_v18  ;;  %v711_v4 = vadd.f32 %v1381_v39, %v565_v34  ;;  %v1851_v26 = vld [vmem:[#allocation21_spill] sm:$0xff] }
 0x114   :  { %1016 = vst [vmem:[#allocation2 + $0x198] sm:$0xff] %v952_v20  ;;  %v743_v27 = vadd.f32 %v1381_v39, %v645_v49  ;;  %v569_v8 = vadd.f32 %v1656_v10, %v1846_v7  ;;  %v649_v33 = vadd.f32 %v1658_v41, %v1847_v11  ;;  %v712_v12 = vadd.f32 %v1383_v40, %v567_v43  ;;  %v1852_v49 = vld [vmem:[#allocation15_spill] sm:$0xff]  ;;  %v1853_v20 = vld [vmem:[#allocation22_spill] sm:$0xff] }
 0x115   :  { %v744_v50 = vadd.f32 %v1383_v40, %v647_v32  ;;  %v571_v61 = vadd.f32 %v570_v29, %v1848_v19  ;;  %v651_v47 = vadd.f32 %v650_v17, %v1849_v51  ;;  %vm775_vm9 = vcmp.ge.f32.partialorder %v711_v4, 0.0  ;;  %v1718_v25 = vpop.f32.mrb[28].mxu0  ;;  %v1720_v31 = vpop.f32.mrb[28].mxu1 }
 0x116   :  { %v857_v14 = vmul.f32 %v1391_v44, %v711_v4  ;;  %vm807_vm10 = vcmp.ge.f32.partialorder %v743_v27, 0.0  ;;  %v889_v60 = vmul.f32 %v1391_v44, %v743_v27  ;;  %vm776_vm11 = vcmp.ge.f32.partialorder %v712_v12, 0.0  ;;  %v1724_v15 = vpop.f32.mrb[29].mxu0  ;;  %v1726_v42 = vpop.f32.mrb[29].mxu1 }
 0x117   :  { %v858_v10 = vmul.f32 %v1393_v45, %v712_v12  ;;  %vm808_vm12 = vcmp.ge.f32.partialorder %v744_v50, 0.0  ;;  %v890_v41 = vmul.f32 %v1393_v45, %v744_v50  ;;  %v713_v17 = vadd.f32 %v1381_v39, %v569_v8  ;;  %v1730_v24 = vpop.f32.mrb[30].mxu0  ;;  %v1732_v23 = vpop.f32.mrb[30].mxu1 }
 0x118   :  { %v921_v2 = vsel %vm775_vm9, %v711_v4, %v857_v14  ;;  %v953_v29 = vsel %vm807_vm10, %v743_v27, %v889_v60  ;;  %v745_v0 = vadd.f32 %v1381_v39, %v649_v33  ;;  %v714_v57 = vadd.f32 %v1383_v40, %v571_v61  ;;  %v1736_v63 = vpop.f32.mrb[31].mxu0  ;;  %v1738_v16 = vpop.f32.mrb[31].mxu1 }
 0x119   :  { %985 = vst [vmem:[#allocation2 + $0xa0] sm:$0xff] %v921_v2  ;;  %1017 = vst [vmem:[#allocation2 + $0x1a0] sm:$0xff] %v953_v29  ;;  %v922_v13 = vsel %vm776_vm11, %v712_v12, %v858_v10  ;;  %v954_v28 = vsel %vm808_vm12, %v744_v50, %v890_v41  ;;  %v746_v58 = vadd.f32 %v1383_v40, %v651_v47  ;;  %vm777_vm13 = vcmp.ge.f32.partialorder %v713_v17, 0.0 }
 0x11a   :  { %986 = vst [vmem:[#allocation2 + $0xa8] sm:$0xff] %v922_v13  ;;  %1018 = vst [vmem:[#allocation2 + $0x1a8] sm:$0xff] %v954_v28  ;;  %v859_v54 = vmul.f32 %v1391_v44, %v713_v17  ;;  %vm809_vm14 = vcmp.ge.f32.partialorder %v745_v0, 0.0  ;;  %v891_v21 = vmul.f32 %v1391_v44, %v745_v0  ;;  %vm778_vm15 = vcmp.ge.f32.partialorder %v714_v57, 0.0 }
 0x11b   :  { %v860_v5 = vmul.f32 %v1393_v45, %v714_v57  ;;  %vm810_vm0 = vcmp.ge.f32.partialorder %v746_v58, 0.0  ;;  %v892_v62 = vmul.f32 %v1393_v45, %v746_v58  ;;  %v575_v22 = vadd.f32 %v1676_v48, %v1850_v35  ;;  %v1854_v48 = vld [vmem:[#allocation5_spill] sm:$0xff] }
 0x11c   :  { %v923_v37 = vsel %vm777_vm13, %v713_v17, %v859_v54  ;;  %v955_v30 = vsel %vm809_vm14, %v745_v0, %v891_v21  ;;  %v655_v59 = vadd.f32 %v1678_v56, %v1851_v26  ;;  %v577_v18 = vadd.f32 %v1682_v55, %v1852_v49  ;;  %v1855_v56 = vld [vmem:[#allocation19_spill] sm:$0xff]  ;;  %v1856_v55 = vld [vmem:[#allocation6_spill] sm:$0xff]  ;;  %v1858_v0 = vld [vmem:[#allocation9_spill] sm:$0xff] }
 0x11d   :  { %987 = vst [vmem:[#allocation2 + $0xb0] sm:$0xff] %v923_v37  ;;  %1019 = vst [vmem:[#allocation2 + $0x1b0] sm:$0xff] %v955_v30  ;;  %v924_v36 = vsel %vm778_vm15, %v714_v57, %v860_v5  ;;  %v956_v34 = vsel %vm810_vm0, %v746_v58, %v892_v62  ;;  %v657_v6 = vadd.f32 %v1684_v3, %v1853_v20  ;;  %v1857_v3 = vld [vmem:[#allocation20_spill] sm:$0xff]  ;;  %v1859_v54 = vld [vmem:[#allocation10_spill] sm:$0xff] }
 0x11e   :  { %988 = vst [vmem:[#allocation2 + $0xb8] sm:$0xff] %v924_v36  ;;  %1020 = vst [vmem:[#allocation2 + $0x1b8] sm:$0xff] %v956_v34  ;;  %v715_v43 = vadd.f32 %v1381_v39, %v575_v22  ;;  %v747_v38 = vadd.f32 %v1381_v39, %v655_v59  ;;  %v579_v32 = vadd.f32 %v1688_v46, %v1854_v48  ;;  %v1860_v5 = vld [vmem:[#allocation25_spill] sm:$0xff] }
 0x11f   :  { %v659_v4 = vadd.f32 %v1690_v52, %v1855_v56  ;;  %v716_v27 = vadd.f32 %v1383_v40, %v577_v18  ;;  %v748_v7 = vadd.f32 %v1383_v40, %v657_v6  ;;  %v581_v8 = vadd.f32 %v1696_v9, %v1856_v55 }
 0x120   :  { %v661_v11 = vadd.f32 %v1698_v53, %v1857_v3  ;;  %vm779_vm1 = vcmp.ge.f32.partialorder %v715_v43, 0.0  ;;  %v861_v33 = vmul.f32 %v1391_v44, %v715_v43  ;;  %vm811_vm2 = vcmp.ge.f32.partialorder %v747_v38, 0.0 }
 0x121   :  { %v893_v12 = vmul.f32 %v1391_v44, %v747_v38  ;;  %vm780_vm3 = vcmp.ge.f32.partialorder %v716_v27, 0.0  ;;  %v862_v46 = vmul.f32 %v1393_v45, %v716_v27  ;;  %vm812_vm4 = vcmp.ge.f32.partialorder %v748_v7, 0.0 }
 0x122   :  { %v894_v52 = vmul.f32 %v1393_v45, %v748_v7  ;;  %v925_v50 = vsel %vm779_vm1, %v715_v43, %v861_v33  ;;  %v717_v61 = vadd.f32 %v1381_v39, %v579_v32  ;;  %v749_v9 = vadd.f32 %v1381_v39, %v659_v4 }
 0x123   :  { %v957_v19 = vsel %vm811_vm2, %v747_v38, %v893_v12  ;;  %989 = vst [vmem:[#allocation2 + $0xc0] sm:$0xff] %v925_v50  ;;  %v926_v53 = vsel %vm780_vm3, %v716_v27, %v862_v46  ;;  %v718_v47 = vadd.f32 %v1383_v40, %v581_v8  ;;  %v750_v14 = vadd.f32 %v1383_v40, %v661_v11 }
 0x124   :  { %1021 = vst [vmem:[#allocation2 + $0x1c0] sm:$0xff] %v957_v19  ;;  %v958_v51 = vsel %vm812_vm4, %v748_v7, %v894_v52  ;;  %990 = vst [vmem:[#allocation2 + $0xc8] sm:$0xff] %v926_v53  ;;  %vm781_vm5 = vcmp.ge.f32.partialorder %v717_v61, 0.0  ;;  %v863_v60 = vmul.f32 %v1391_v44, %v717_v61  ;;  %vm813_vm6 = vcmp.ge.f32.partialorder %v749_v9, 0.0 }
 0x125   :  { %1022 = vst [vmem:[#allocation2 + $0x1c8] sm:$0xff] %v958_v51  ;;  %v895_v10 = vmul.f32 %v1391_v44, %v749_v9  ;;  %vm782_vm7 = vcmp.ge.f32.partialorder %v718_v47, 0.0  ;;  %v864_v41 = vmul.f32 %v1393_v45, %v718_v47  ;;  %vm814_vm8 = vcmp.ge.f32.partialorder %v750_v14, 0.0 }
 0x126   :  { %v896_v2 = vmul.f32 %v1393_v45, %v750_v14  ;;  %v927_v29 = vsel %vm781_vm5, %v717_v61, %v863_v60  ;;  %v585_v13 = vadd.f32 %v1718_v25, %v1858_v0  ;;  %v665_v28 = vadd.f32 %v1720_v31, %v1548_v1  ;;  %v1861_v25 = vld [vmem:[#allocation7_spill] sm:$0xff] }
 0x127   :  { %v959_v17 = vsel %vm813_vm6, %v749_v9, %v895_v10  ;;  %991 = vst [vmem:[#allocation2 + $0xd0] sm:$0xff] %v927_v29  ;;  %v928_v57 = vsel %vm782_vm7, %v718_v47, %v864_v41  ;;  %v587_v21 = vadd.f32 %v1724_v15, %v1859_v54  ;;  %v667_v62 = vadd.f32 %v1726_v42, %v1860_v5  ;;  %v1862_v1 = vld [vmem:[#allocation23_spill] sm:$0xff]  ;;  %v1863_v15 = vld [vmem:[#allocation8_spill] sm:$0xff] }
 0x128   :  { %1023 = vst [vmem:[#allocation2 + $0x1d0] sm:$0xff] %v959_v17  ;;  %v960_v58 = vsel %vm814_vm8, %v750_v14, %v896_v2  ;;  %992 = vst [vmem:[#allocation2 + $0xd8] sm:$0xff] %v928_v57  ;;  %v719_v37 = vadd.f32 %v1381_v39, %v585_v13  ;;  %v751_v30 = vadd.f32 %v1381_v39, %v665_v28  ;;  %v1864_v42 = vld [vmem:[#allocation24_spill] sm:$0xff] }
 0x129   :  { %1024 = vst [vmem:[#allocation2 + $0x1d8] sm:$0xff] %v960_v58  ;;  %v589_v35 = vadd.f32 %v1730_v24, %v1861_v25  ;;  %v669_v31 = vadd.f32 %v1732_v23, %v1862_v1  ;;  %v720_v22 = vadd.f32 %v1383_v40, %v587_v21  ;;  %v752_v26 = vadd.f32 %v1383_v40, %v667_v62 }
 0x12a   :  { %v591_v59 = vadd.f32 %v1736_v63, %v1863_v15  ;;  %v671_v36 = vadd.f32 %v1738_v16, %v1864_v42  ;;  %vm783_vm9 = vcmp.ge.f32.partialorder %v719_v37, 0.0  ;;  %v865_v34 = vmul.f32 %v1391_v44, %v719_v37 }
 0x12b   :  { %vm815_vm10 = vcmp.ge.f32.partialorder %v751_v30, 0.0  ;;  %v897_v49 = vmul.f32 %v1391_v44, %v751_v30  ;;  %vm784_vm11 = vcmp.ge.f32.partialorder %v720_v22, 0.0  ;;  %v866_v24 = vmul.f32 %v1393_v45, %v720_v22 }
 0x12c   :  { %vm816_vm12 = vcmp.ge.f32.partialorder %v752_v26, 0.0  ;;  %v898_v23 = vmul.f32 %v1393_v45, %v752_v26  ;;  %v929_v18 = vsel %vm783_vm9, %v719_v37, %v865_v34  ;;  %v721_v6 = vadd.f32 %v1381_v39, %v589_v35 }
 0x12d   :  { %v961_v20 = vsel %vm815_vm10, %v751_v30, %v897_v49  ;;  %v753_v63 = vadd.f32 %v1381_v39, %v669_v31  ;;  %993 = vst [vmem:[#allocation2 + $0xe0] sm:$0xff] %v929_v18  ;;  %v930_v16 = vsel %vm784_vm11, %v720_v22, %v866_v24  ;;  %v722_v38 = vadd.f32 %v1383_v40, %v591_v59 }
 0x12e   :  { %1025 = vst [vmem:[#allocation2 + $0x1e0] sm:$0xff] %v961_v20  ;;  %v962_v43 = vsel %vm816_vm12, %v752_v26, %v898_v23  ;;  %v754_v48 = vadd.f32 %v1383_v40, %v671_v36  ;;  %994 = vst [vmem:[#allocation2 + $0xe8] sm:$0xff] %v930_v16  ;;  %vm785_vm13 = vcmp.ge.f32.partialorder %v721_v6, 0.0  ;;  %v867_v32 = vmul.f32 %v1391_v44, %v721_v6 }
 0x12f   :  { %1026 = vst [vmem:[#allocation2 + $0x1e8] sm:$0xff] %v962_v43  ;;  %vm817_vm14 = vcmp.ge.f32.partialorder %v753_v63, 0.0  ;;  %v899_v56 = vmul.f32 %v1391_v44, %v753_v63  ;;  %vm786_vm15 = vcmp.ge.f32.partialorder %v722_v38, 0.0  ;;  %v868_v39 = vmul.f32 %v1393_v45, %v722_v38 }
 0x130   :  { %vm818_vm0 = vcmp.ge.f32.partialorder %v754_v48, 0.0  ;;  %v900_v4 = vmul.f32 %v1393_v45, %v754_v48  ;;  %v931_v27 = vsel %vm785_vm13, %v721_v6, %v867_v32 }
 0x131   :  { %v963_v7 = vsel %vm817_vm14, %v753_v63, %v899_v56  ;;  %995 = vst [vmem:[#allocation2 + $0xf0] sm:$0xff] %v931_v27  ;;  %v932_v40 = vsel %vm786_vm15, %v722_v38, %v868_v39 }
 0x132   :  { %1027 = vst [vmem:[#allocation2 + $0x1f0] sm:$0xff] %v963_v7  ;;  %v964_v55 = vsel %vm818_vm0, %v754_v48, %v900_v4  ;;  %996 = vst [vmem:[#allocation2 + $0xf8] sm:$0xff] %v932_v40 }
 0x133   :  { %1028 = vst [vmem:[#allocation2 + $0x1f8] sm:$0xff] %v964_v55 }
 0x134   :  { %1124 = shalt.err (!%p1121_p4)
}
 0x135   :  { %s1125_s15 = scalar_lea.hbm %s1822_s4, 8192 }
 0x136   :  { %p1126_p5 = scmp.ne.s32.totalorder %s1822_s4, %s1125_s15  ;;  %p1129_p6 = scmp.lt.u32.totalorder %s1125_s15, %s1822_s4 }
 0x138   :  { %p1131_p7 = pnand %p1129_p6, %p1126_p5 }
 0x13a   :  { %1134 = shalt.err (!%p1131_p7)
}
 0x13b   :  { %s1139_s20 = smov 256   ;;  %s1140_s21 = smov 16  }
 0x13c   :  { %1040 = dma.vmem_to_hbm [thread:$0]  %s1035_s3, 8192, %s1822_s4, [#allocation3], %s1139_s20, %s1139_s20, %s1140_s21  }
 0x13d   :  { %1135 = dma.done.wait [#allocation3], 8192  }
 0x13e   :  { %1136 = vsyncadd [#allocation3], 4294959104 }
 0x13f   :  { %1044 = vsyncpa [#allocation3], 1 }

</bundles_post_ra>
